<compile_context>
chip_gen: v6e
topology: v6e:2x2x1
jax: 0.10.0
libtpu: 0.0.40
codegen_flags: <defaults>
</compile_context>

<pallas_src>
import functools

import jax
import jax.numpy as jnp
from jax.experimental import pallas as pl
from jax.experimental.pallas import tpu as pltpu

# "conf" constants (synthetic, small)
FEATURE_NUMB = 32
ACTIONS_NUMB = 8

H1, H2, H3 = 60, 60, 30     # hidden widths

_MAX_TB = 2048              # max batch tile (rows per grid step)
_SPLIT_BATCH = 256          # force >=2 grid steps once the batch is this big


def _round_up(x: int, m: int) -> int:
    return ((x + m - 1) // m) * m


def _value_nn_kernel(*refs, training: bool):
    """Fused MLP forward: relu(fc1) -> relu(fc2) -> dropout(relu(fc3)) -> fc4."""
    if training:
        (x_ref, w1_ref, b1_ref, w2_ref, b2_ref, w3_ref, b3_ref,
         w4_ref, b4_ref, u_ref, o_ref) = refs
    else:
        (x_ref, w1_ref, b1_ref, w2_ref, b2_ref, w3_ref, b3_ref,
         w4_ref, b4_ref, o_ref) = refs

    x = x_ref[...]

    # fc1 + relu
    h = jnp.dot(x, w1_ref[...], preferred_element_type=jnp.float32) + b1_ref[...]
    h = jnp.maximum(h, 0.0)

    # fc2 + relu
    h = jnp.dot(h, w2_ref[...], preferred_element_type=jnp.float32) + b2_ref[...]
    h = jnp.maximum(h, 0.0)

    # fc3 + relu
    h = jnp.dot(h, w3_ref[...], preferred_element_type=jnp.float32) + b3_ref[...]
    h = jnp.maximum(h, 0.0)

    # dropout(p=0.5), matching F.dropout(..., training=self.training).
    # `training` is a static Python flag; eval mode => identity.
    if training:
        keep = u_ref[...] < jnp.float32(0.5)          # p_keep = 0.5
        h = jnp.where(keep, h * 2.0, 0.0)             # inverted dropout rescale

    # fc4 (no activation).  Output block is (TB, ACTIONS_NUMB): small masked
    # stores, but ~16x less HBM writeback than padding to 128 lanes.
    o_ref[...] = (jnp.dot(h, w4_ref[...], preferred_element_type=jnp.float32)
                  + b4_ref[...])


def value_nn_forward(status, params, *, training: bool = False, rng=None):
    """status: (B, FEATURE_NUMB) f32.  params: dict of (in,out) weights & (1,out) biases."""
    B = status.shape[0]

    # Balanced batch tiles: keep padding <= 7 rows, and give v7x's two
    # TensorCores separate grid steps once there is enough work.
    num_tiles = max(pl.cdiv(B, _MAX_TB), 2 if B >= _SPLIT_BATCH else 1)
    TB = _round_up(pl.cdiv(B, num_tiles), 8)
    B_pad = num_tiles * TB
    if B_pad != B:
        status = jnp.pad(status, ((0, B_pad - B), (0, 0)))

    kernel = functools.partial(_value_nn_kernel, training=training)

    def resident(arr):
        # Whole-array block, constant block index -> DMA'd once, VMEM-resident.
        return pl.BlockSpec(arr.shape, lambda i: (0, 0))

    in_specs = [
        pl.BlockSpec((TB, FEATURE_NUMB), lambda i: (i, 0)),   # batch-tiled input
        resident(params["w1"]), resident(params["b1"]),
        resident(params["w2"]), resident(params["b2"]),
        resident(params["w3"]), resident(params["b3"]),
        resident(params["w4"]), resident(params["b4"]),
    ]
    args = [status,
            params["w1"], params["b1"],
            params["w2"], params["b2"],
            params["w3"], params["b3"],
            params["w4"], params["b4"]]

    if training:
        if rng is None:
            rng = jax.random.PRNGKey(0)
        # TODO(synk): dropout mask comes from jax.random, not torch's RNG, so
        # it is statistically correct but not bit-identical to PyTorch.
        u = jax.random.uniform(rng, (B_pad, H3), jnp.float32)
        in_specs.append(pl.BlockSpec((TB, H3), lambda i: (i, 0)))
        args.append(u)

    out_spec = pl.BlockSpec((TB, ACTIONS_NUMB), lambda i: (i, 0))

    out = pl.pallas_call(
        kernel,
        out_shape=jax.ShapeDtypeStruct((B_pad, ACTIONS_NUMB), jnp.float32),
        grid=(num_tiles,),
        in_specs=in_specs,
        out_specs=out_spec,
        compiler_params=pltpu.CompilerParams(
            dimension_semantics=("parallel",)),   # megacore on v7x
    )(*args)

    return out if B_pad == B else out[:B]


def init_params(key):
    """Deterministic init; mimics PyTorch Linear's U(-1/sqrt(fan_in), 1/sqrt(fan_in)).

    Weights are stored transposed relative to torch, i.e. (in, out).
    """
    dims = [(FEATURE_NUMB, H1), (H1, H2), (H2, H3), (H3, ACTIONS_NUMB)]
    params = {}
    for i, (fan_in, fan_out) in enumerate(dims, start=1):
        key, kw, kb = jax.random.split(key, 3)
        bound = 1.0 / jnp.sqrt(jnp.float32(fan_in))
        params[f"w{i}"] = jax.random.uniform(
            kw, (fan_in, fan_out), jnp.float32, -bound, bound)
        params[f"b{i}"] = jax.random.uniform(
            kb, (1, fan_out), jnp.float32, -bound, bound)
    return params


def _reference_forward(status, params):
    """Plain-JAX reference (eval mode) for a sanity check."""
    h = jnp.maximum(status @ params["w1"] + params["b1"], 0.0)
    h = jnp.maximum(h @ params["w2"] + params["b2"], 0.0)
    h = jnp.maximum(h @ params["w3"] + params["b3"], 0.0)
    return h @ params["w4"] + params["b4"]


if __name__ == "__main__":
    key = jax.random.PRNGKey(0)
    key, kx, kx2, kdrop = jax.random.split(key, 4)
    params = init_params(key)

    # Small primary check (single grid step).
    batch = 8
    status = jax.random.normal(kx, (batch, FEATURE_NUMB), jnp.float32)
    out = jax.block_until_ready(value_nn_forward(status, params, training=False))
    ref = _reference_forward(status, params)
    assert out.shape == (batch, ACTIONS_NUMB), out.shape
    assert jnp.allclose(out, ref, atol=1e-5, rtol=1e-5), "mismatch vs JAX reference"

    # Multi-tile check (exercises grid, balanced padding of a non-multiple batch).
    batch2 = 520
    status2 = jax.random.normal(kx2, (batch2, FEATURE_NUMB), jnp.float32)
    out2 = jax.block_until_ready(value_nn_forward(status2, params, training=False))
    ref2 = _reference_forward(status2, params)
    assert out2.shape == (batch2, ACTIONS_NUMB), out2.shape
    assert jnp.allclose(out2, ref2, atol=1e-5, rtol=1e-5), "mismatch vs JAX reference (tiled)"

    # Training path smoke test (dropout mask fed as a kernel input).
    out_tr = jax.block_until_ready(
        value_nn_forward(status2, params, training=True, rng=kdrop))
    assert out_tr.shape == (batch2, ACTIONS_NUMB)
    assert bool(jnp.all(jnp.isfinite(out_tr)))

    print("KERNEL_OK")
</pallas_src>

<mosaic_0001>
module attributes {stable_mosaic.version = 11 : i64} {
  func.func @_value_nn_kernel(%arg0: i32, %arg1: memref<8x32xf32, #tpu.memory_space<vmem>>, %arg2: memref<32x60xf32, #tpu.memory_space<vmem>>, %arg3: memref<1x60xf32, #tpu.memory_space<vmem>>, %arg4: memref<60x60xf32, #tpu.memory_space<vmem>>, %arg5: memref<1x60xf32, #tpu.memory_space<vmem>>, %arg6: memref<60x30xf32, #tpu.memory_space<vmem>>, %arg7: memref<1x30xf32, #tpu.memory_space<vmem>>, %arg8: memref<30x8xf32, #tpu.memory_space<vmem>>, %arg9: memref<1x8xf32, #tpu.memory_space<vmem>>, %arg10: memref<8x8xf32, #tpu.memory_space<vmem>>) attributes {dimension_semantics = [#tpu.dimension_semantics<parallel>], iteration_bounds = array<i64: 1>, scalar_prefetch = 0 : i64, scratch_operands = 0 : i64, tpu.core_type = #tpu.core_type<tc>, window_params = [{transform_indices = @transform_0, window_bounds = array<i64: 8, 32>}, {pipeline_mode = #tpu.pipeline_mode<synchronous>, transform_indices = @transform_1, window_bounds = array<i64: 32, 60>}, {pipeline_mode = #tpu.pipeline_mode<synchronous>, transform_indices = @transform_2, window_bounds = array<i64: 1, 60>}, {pipeline_mode = #tpu.pipeline_mode<synchronous>, transform_indices = @transform_3, window_bounds = array<i64: 60, 60>}, {pipeline_mode = #tpu.pipeline_mode<synchronous>, transform_indices = @transform_4, window_bounds = array<i64: 1, 60>}, {pipeline_mode = #tpu.pipeline_mode<synchronous>, transform_indices = @transform_5, window_bounds = array<i64: 60, 30>}, {pipeline_mode = #tpu.pipeline_mode<synchronous>, transform_indices = @transform_6, window_bounds = array<i64: 1, 30>}, {pipeline_mode = #tpu.pipeline_mode<synchronous>, transform_indices = @transform_7, window_bounds = array<i64: 30, 8>}, {pipeline_mode = #tpu.pipeline_mode<synchronous>, transform_indices = @transform_8, window_bounds = array<i64: 1, 8>}, {transform_indices = @transform_9, window_bounds = array<i64: 8, 8>}]} {
    %c0 = arith.constant 0 : index
    %c0_0 = arith.constant 0 : index
    %0 = vector.load %arg1[%c0, %c0_0] : memref<8x32xf32, #tpu.memory_space<vmem>>, vector<8x32xf32>
    %c0_1 = arith.constant 0 : index
    %c0_2 = arith.constant 0 : index
    %1 = vector.load %arg2[%c0_1, %c0_2] : memref<32x60xf32, #tpu.memory_space<vmem>>, vector<32x60xf32>
    %cst = arith.constant dense<0.000000e+00> : vector<8x60xf32>
    %2 = tpu.matmul %0, %1, %cst {dimension_numbers = #tpu.dot_dimension_numbers<[1], [0], [0], [1], [0, 0, 1, 1], [], []>} : vector<8x32xf32>, vector<32x60xf32>, vector<8x60xf32> -> vector<8x60xf32>
    %c0_3 = arith.constant 0 : index
    %c0_4 = arith.constant 0 : index
    %3 = vector.load %arg3[%c0_3, %c0_4] : memref<1x60xf32, #tpu.memory_space<vmem>>, vector<1x60xf32>
    %4 = vector.broadcast %3 : vector<1x60xf32> to vector<8x60xf32>
    %5 = arith.addf %2, %4 : vector<8x60xf32>
    %cst_5 = arith.constant 0.000000e+00 : f32
    %6 = vector.broadcast %cst_5 : f32 to vector<8x60xf32>
    %7 = arith.maximumf %5, %6 : vector<8x60xf32>
    %c0_6 = arith.constant 0 : index
    %c0_7 = arith.constant 0 : index
    %8 = vector.load %arg4[%c0_6, %c0_7] : memref<60x60xf32, #tpu.memory_space<vmem>>, vector<60x60xf32>
    %cst_8 = arith.constant dense<0.000000e+00> : vector<8x60xf32>
    %9 = tpu.matmul %7, %8, %cst_8 {dimension_numbers = #tpu.dot_dimension_numbers<[1], [0], [0], [1], [0, 0, 1, 1], [], []>} : vector<8x60xf32>, vector<60x60xf32>, vector<8x60xf32> -> vector<8x60xf32>
    %c0_9 = arith.constant 0 : index
    %c0_10 = arith.constant 0 : index
    %10 = vector.load %arg5[%c0_9, %c0_10] : memref<1x60xf32, #tpu.memory_space<vmem>>, vector<1x60xf32>
    %11 = vector.broadcast %10 : vector<1x60xf32> to vector<8x60xf32>
    %12 = arith.addf %9, %11 : vector<8x60xf32>
    %cst_11 = arith.constant 0.000000e+00 : f32
    %13 = vector.broadcast %cst_11 : f32 to vector<8x60xf32>
    %14 = arith.maximumf %12, %13 : vector<8x60xf32>
    %c0_12 = arith.constant 0 : index
    %c0_13 = arith.constant 0 : index
    %15 = vector.load %arg6[%c0_12, %c0_13] : memref<60x30xf32, #tpu.memory_space<vmem>>, vector<60x30xf32>
    %cst_14 = arith.constant dense<0.000000e+00> : vector<8x30xf32>
    %16 = tpu.matmul %14, %15, %cst_14 {dimension_numbers = #tpu.dot_dimension_numbers<[1], [0], [0], [1], [0, 0, 1, 1], [], []>} : vector<8x60xf32>, vector<60x30xf32>, vector<8x30xf32> -> vector<8x30xf32>
    %c0_15 = arith.constant 0 : index
    %c0_16 = arith.constant 0 : index
    %17 = vector.load %arg7[%c0_15, %c0_16] : memref<1x30xf32, #tpu.memory_space<vmem>>, vector<1x30xf32>
    %18 = vector.broadcast %17 : vector<1x30xf32> to vector<8x30xf32>
    %19 = arith.addf %16, %18 : vector<8x30xf32>
    %cst_17 = arith.constant 0.000000e+00 : f32
    %20 = vector.broadcast %cst_17 : f32 to vector<8x30xf32>
    %21 = arith.maximumf %19, %20 : vector<8x30xf32>
    %c0_18 = arith.constant 0 : index
    %c0_19 = arith.constant 0 : index
    %22 = vector.load %arg8[%c0_18, %c0_19] : memref<30x8xf32, #tpu.memory_space<vmem>>, vector<30x8xf32>
    %cst_20 = arith.constant dense<0.000000e+00> : vector<8x8xf32>
    %23 = tpu.matmul %21, %22, %cst_20 {dimension_numbers = #tpu.dot_dimension_numbers<[1], [0], [0], [1], [0, 0, 1, 1], [], []>} : vector<8x30xf32>, vector<30x8xf32>, vector<8x8xf32> -> vector<8x8xf32>
    %c0_21 = arith.constant 0 : index
    %c0_22 = arith.constant 0 : index
    %24 = vector.load %arg9[%c0_21, %c0_22] : memref<1x8xf32, #tpu.memory_space<vmem>>, vector<1x8xf32>
    %25 = vector.broadcast %24 : vector<1x8xf32> to vector<8x8xf32>
    %26 = arith.addf %23, %25 : vector<8x8xf32>
    %c0_23 = arith.constant 0 : index
    %c0_24 = arith.constant 0 : index
    %27 = vector.load %arg10[%c0_23, %c0_24] : memref<8x8xf32, #tpu.memory_space<vmem>>, vector<8x8xf32>
    tpu.vector_store %arg10[%c0_23, %c0_24], %26 {strides = array<i32>} : memref<8x8xf32, #tpu.memory_space<vmem>>, vector<8x8xf32>,
    return
  }
  func.func @transform_0(%arg0: i32) -> (i32, i32) {
    %c0_i32 = arith.constant 0 : i32
    %c0_i32_0 = arith.constant 0 : i32
    return %arg0, %c0_i32 : i32, i32
  }
  func.func @transform_1(%arg0: i32) -> (i32, i32) {
    %c0_i32 = arith.constant 0 : i32
    %c0_i32_0 = arith.constant 0 : i32
    %c0_i32_1 = arith.constant 0 : i32
    return %c0_i32, %c0_i32_0 : i32, i32
  }
  func.func @transform_2(%arg0: i32) -> (i32, i32) {
    %c0_i32 = arith.constant 0 : i32
    %c0_i32_0 = arith.constant 0 : i32
    %c0_i32_1 = arith.constant 0 : i32
    return %c0_i32, %c0_i32_0 : i32, i32
  }
  func.func @transform_3(%arg0: i32) -> (i32, i32) {
    %c0_i32 = arith.constant 0 : i32
    %c0_i32_0 = arith.constant 0 : i32
    %c0_i32_1 = arith.constant 0 : i32
    return %c0_i32, %c0_i32_0 : i32, i32
  }
  func.func @transform_4(%arg0: i32) -> (i32, i32) {
    %c0_i32 = arith.constant 0 : i32
    %c0_i32_0 = arith.constant 0 : i32
    %c0_i32_1 = arith.constant 0 : i32
    return %c0_i32, %c0_i32_0 : i32, i32
  }
  func.func @transform_5(%arg0: i32) -> (i32, i32) {
    %c0_i32 = arith.constant 0 : i32
    %c0_i32_0 = arith.constant 0 : i32
    %c0_i32_1 = arith.constant 0 : i32
    return %c0_i32, %c0_i32_0 : i32, i32
  }
  func.func @transform_6(%arg0: i32) -> (i32, i32) {
    %c0_i32 = arith.constant 0 : i32
    %c0_i32_0 = arith.constant 0 : i32
    %c0_i32_1 = arith.constant 0 : i32
    return %c0_i32, %c0_i32_0 : i32, i32
  }
  func.func @transform_7(%arg0: i32) -> (i32, i32) {
    %c0_i32 = arith.constant 0 : i32
    %c0_i32_0 = arith.constant 0 : i32
    %c0_i32_1 = arith.constant 0 : i32
    return %c0_i32, %c0_i32_0 : i32, i32
  }
  func.func @transform_8(%arg0: i32) -> (i32, i32) {
    %c0_i32 = arith.constant 0 : i32
    %c0_i32_0 = arith.constant 0 : i32
    %c0_i32_1 = arith.constant 0 : i32
    return %c0_i32, %c0_i32_0 : i32, i32
  }
  func.func @transform_9(%arg0: i32) -> (i32, i32) {
    %c0_i32 = arith.constant 0 : i32
    %c0_i32_0 = arith.constant 0 : i32
    return %arg0, %c0_i32 : i32, i32
  }
}

</mosaic_0001>

<bundles_post_ra>
// kernel: tpu_custom_call.1
= control target key start
LH: loop header
LB: loop body
LE: loop exit
PB: predicated region body
PF: predicated region fallthrough
CT: control target
= control target key end

     0   :  { %v535_v1 = vmov 0.0   ;;  %vm536_vm0 = vmmov 0   ;;  %vm139_vm1 = vcmask 1043456   ;;  %s714_s0 = inlined_call_operand.vmem [shape: f32[8,32], index: 0, kind: input, shape index: {}]   ;;  %s715_s1 = inlined_call_operand.vmem [shape: f32[32,60], index: 1, kind: input, shape index: {}]   ;;  %s716_s2 = inlined_call_operand.vmem [shape: f32[1,60], index: 2, kind: input, shape index: {}]   ;;  %s717_s3 = inlined_call_operand.vmem [shape: f32[60,60], index: 3, kind: input, shape index: {}]   ;;  %s718_s4 = inlined_call_operand.vmem [shape: f32[1,60], index: 4, kind: input, shape index: {}]   ;;  %s719_s5 = inlined_call_operand.vmem [shape: f32[60,30], index: 5, kind: input, shape index: {}]   ;;  %s720_s6 = inlined_call_operand.vmem [shape: f32[1,30], index: 6, kind: input, shape index: {}]   ;;  %s721_s7 = inlined_call_operand.vmem [shape: f32[30,8], index: 7, kind: input, shape index: {}]   ;;  %s722_s8 = inlined_call_operand.vmem [shape: f32[1,8], index: 8, kind: input, shape index: {}]   ;;  %s723_s9 = inlined_call_operand.hbm [shape: f32[8,8], index: 9, kind: output, shape index: {}]  }
   0x1   :  { %v37_v0 = vld [vmem:[%s715_s1 + $0x18] sm:$0xff]  ;;  %450 = vmatprep.subr.mxu0 %v535_v1  ;;  %v36_v2 = vld [vmem:[%s715_s1 + $0x10] sm:$0xff]  ;;  %458 = vmatprep.mubr.msk.f32.mxu0 %vm536_vm0, %v535_v1  ;;  %v35_v5 = vld [vmem:[%s715_s1 + $0x8] sm:$0xff] }
   0x2   :  { %v127_v3 = vld [vmem:[%s717_s3 + $0x38] sm:$0xf]  ;;  %451 = vmatpush3.msra.mxu0 %v37_v0  ;;  %461 = vmatprep.subr.mxu1 %v535_v1  ;;  %v126_v4 = vld [vmem:[%s717_s3 + $0x30] sm:$0xff] }
   0x3   :  { %452 = vmatprep.subr.mxu0 %v535_v1  ;;  %462 = vmatpush3.msk.msra.mxu1 %vm139_vm1, %v127_v3 }
   0x4   :  { %14 = vsyncpa [#allocation3], 0  ;;  %453 = vmatpush3.msra.mxu0 %v36_v2  ;;  %463 = vmatprep.subr.mxu1 %v535_v1  ;;  %v125_v6 = vld [vmem:[%s717_s3 + $0x28] sm:$0xff]  ;;  %v34_v7 = vld [vmem:[%s715_s1] sm:$0xff]  ;;  %vm45_vm2 = vcmask 261120   ;;  %vm135_vm3 = vcmask 490496  }
   0x5   :  { %454 = vmatprep.subr.mxu0 %v535_v1  ;;  %464 = vmatpush3.msra.mxu1 %v126_v4  ;;  %v33_v8 = vld [vmem:[%s714_s0] sm:$0xff]  ;;  %v123_v10 = vld [vmem:[%s717_s3 + $0x18] sm:$0xff]  ;;  %v122_v11 = vld [vmem:[%s717_s3 + $0x10] sm:$0xff]  ;;  %vm321_vm4 = vcmask 1045504   ;;  %vm317_vm5 = vcmask 244736   ;;  %s537_s17 = smov [#allocation2]  }
   0x6   :  { %455 = vmatpush3.msra.mxu0 %v35_v5  ;;  %465 = vmatprep.subr.mxu1 %v535_v1  ;;  %v124_v9 = vld [vmem:[%s717_s3 + $0x20] sm:$0xff]  ;;  %v121_v12 = vld [vmem:[%s717_s3 + $0x8] sm:$0xff]  ;;  %v221_v14 = vld [vmem:[%s719_s5 + $0x38] sm:$0xf]  ;;  %vm395_vm6 = vcmask 64512  }
   0x7   :  { %456 = vmatprep.subr.mxu0 %v535_v1  ;;  %466 = vmatpush3.msra.mxu1 %v125_v6  ;;  %v120_v13 = vld [vmem:[%s717_s3] sm:$0xff]  ;;  %v220_v15 = vld [vmem:[%s719_s5 + $0x30] sm:$0xff]  ;;  %v219_v16 = vld [vmem:[%s719_s5 + $0x28] sm:$0xff]  ;;  %s403_s3 = sshll.u32 %s537_s17, 4  ;;  %s404_s3 = int_to_ptr.vmem [resolvable:$true] %s403_s3 }
   0x8   :  { %457 = vmatpush3.msra.mxu0 %v34_v7  ;;  %467 = vmatprep.subr.mxu1 %v535_v1  ;;  %v218_v17 = vld [vmem:[%s719_s5 + $0x20] sm:$0xff]  ;;  %v217_v18 = vld [vmem:[%s719_s5 + $0x18] sm:$0xff]  ;;  %v216_v24 = vld [vmem:[%s719_s5 + $0x10] sm:$0xff]  ;;  %p518_p1 = scmp.lt.s32.totalorder %s404_s3, %s404_s3 }
   0x9   :  { %459 = vmatmul.mubr.msk.f32.vlgmr.msra.gmra.mxu0 %vm45_vm2, %v33_v8  ;;  %468 = vmatpush3.msra.mxu1 %v124_v9  ;;  %v411_v19 = vld [vmem:[%s716_s2] ss:$0 sm:$0xff]  ;;  %v215_v25 = vld [vmem:[%s719_s5 + $0x8] sm:$0xff]  ;;  %v309_v27 = vld [vmem:[%s721_s7 + $0x18] sm:$0x3f] }
   0xa   :  { %469 = vmatprep.subr.mxu1 %v535_v1  ;;  %477 = vmatprep.mubr.msk.f32.mxu1 %vm536_vm0, %v535_v1  ;;  %v214_v26 = vld [vmem:[%s719_s5] sm:$0xff]  ;;  %v308_v33 = vld [vmem:[%s721_s7 + $0x10] sm:$0xff]  ;;  %v307_v34 = vld [vmem:[%s721_s7 + $0x8] sm:$0xff] }
   0xb   :  { %470 = vmatpush3.msra.mxu1 %v123_v10  ;;  %480 = vmatprep.subr.mxu0 %v535_v1  ;;  %v413_v28 = vld [vmem:[%s718_s4] ss:$0 sm:$0xff] }
   0xc   :  { %471 = vmatprep.subr.mxu1 %v535_v1  ;;  %496 = vmatprep.mubr.msk.f32.mxu0 %vm536_vm0, %v535_v1  ;;  %v306_v35 = vld [vmem:[%s721_s7] sm:$0xff]  ;;  %s513_s7 = scalar_lea.vmem %s404_s3, 128 }
   0xd   :  { %472 = vmatpush3.msra.mxu1 %v122_v11  ;;  %481 = vmatpush3.msk.msra.mxu0 %vm139_vm1, %v221_v14  ;;  %v416_v36 = vld [vmem:[%s720_s6] ss:$0 sm:$0xff]  ;;  %p514_p0 = scmp.ne.s32.totalorder %s404_s3, %s513_s7  ;;  %p519_p2 = scmp.lt.s32.totalorder %s513_s7, %s513_s7 }
   0xe   :  { %473 = vmatprep.subr.mxu1 %v535_v1  ;;  %482 = vmatprep.subr.mxu0 %v535_v1  ;;  %v419_v41 = vld [vmem:[%s722_s8] ss:$0 sm:$0xff] }
   0xf   :  { %474 = vmatpush3.msra.mxu1 %v121_v12  ;;  %483 = vmatpush3.msra.mxu0 %v220_v15  ;;  %p520_p3 = por %p519_p2, %p518_p1 }
  0x10   :  { %475 = vmatprep.subr.mxu1 %v535_v1  ;;  %484 = vmatprep.subr.mxu0 %v535_v1 }
  0x11   :  { %476 = vmatpush3.msra.mxu1 %v120_v13  ;;  %485 = vmatpush3.msra.mxu0 %v219_v16  ;;  %p521_p4 = pnand %p520_p3, %p514_p0 }
  0x12   :  { %499 = vmatprep.subr.mxu1 %v535_v1  ;;  %486 = vmatprep.subr.mxu0 %v535_v1 }
  0x13   :  { %487 = vmatpush3.msra.mxu0 %v218_v17 }
  0x14   :  { %488 = vmatprep.subr.mxu0 %v535_v1 }
  0x15   :  { %489 = vmatpush3.msra.mxu0 %v217_v18 }
  0x16   :  { %490 = vmatprep.subr.mxu0 %v535_v1 }
  0x17   :  { %491 = vmatpush3.msra.mxu0 %v216_v24 }
  0x18   :  { %492 = vmatprep.subr.mxu0 %v535_v1 }
  0x19   :  { %493 = vmatpush3.msra.mxu0 %v215_v25 }
  0x1a   :  { %494 = vmatprep.subr.mxu0 %v535_v1 }
  0x1b   :  { %495 = vmatpush3.msra.mxu0 %v214_v26 }
  0xc9   :  { %v115_v20 = vpop.f32.mrf.mxu0 }
  0xca   :  { %v116_v21 = vadd.f32 %v411_v19, %v115_v20 }
  0xcb   :  { %v460_v22 = vpop.f32.mrf.mxu0 }
  0xcc   :  { %v119_v23 = vmax.f32 %v116_v21, 0.0 }
  0xce   :  { %478 = vmatmul.mubr.msk.f32.vlgmr.msra.gmra.mxu1 %vm135_vm3, %v119_v23 }
  0xcf   :  { %507 = vmatprep.mubr.msk.f32.mxu1 %vm536_vm0, %v535_v1  ;;  %500 = vmatpush3.msk.msra.mxu1 %vm321_vm4, %v309_v27 }
  0xd0   :  { %501 = vmatprep.subr.mxu1 %v535_v1 }
  0xd1   :  { %502 = vmatpush3.msra.mxu1 %v308_v33 }
  0xd2   :  { %503 = vmatprep.subr.mxu1 %v535_v1 }
  0xd3   :  { %504 = vmatpush3.msra.mxu1 %v307_v34 }
  0xd4   :  { %505 = vmatprep.subr.mxu1 %v535_v1 }
  0xd5   :  { %506 = vmatpush3.msra.mxu1 %v306_v35 }
 0x18e   :  { %v209_v29 = vpop.f32.mrf.mxu1 }
 0x18f   :  { %v210_v30 = vadd.f32 %v413_v28, %v209_v29 }
 0x190   :  { %v479_v31 = vpop.f32.mrf.mxu1 }
 0x191   :  { %v213_v32 = vmax.f32 %v210_v30, 0.0 }
 0x193   :  { %497 = vmatmul.mubr.msk.f32.vlgmr.msra.gmra.mxu0 %vm135_vm3, %v213_v32 }
 0x253   :  { %v301_v37 = vpop.f32.mrf.mxu0 }
 0x254   :  { %v302_v38 = vadd.f32 %v416_v36, %v301_v37 }
 0x255   :  { %v498_v39 = vpop.f32.mrf.mxu0 }
 0x256   :  { %v305_v40 = vmax.f32 %v302_v38, 0.0 }
 0x258   :  { %508 = vmatmul.mubr.msk.f32.vlgmr.msra.gmra.mxu1 %vm317_vm5, %v305_v40 }
 0x318   :  { %v391_v42 = vpop.f32.mrf.mxu1 }
 0x319   :  { %v392_v43 = vadd.f32 %v419_v41, %v391_v42 }
 0x31a   :  { %v509_v44 = vpop.f32.mrf.mxu1 }
 0x31b   :  { %396 = vst.msk [vmem:[#allocation2] sm:$0xff] %vm395_vm6, %v392_v43 }
 0x31c   :  { %524 = shalt.err (!%p521_p4)
}
 0x31d   :  { %406 = dma.vmem_to_hbm [thread:$0]  %s404_s3, 128, %s723_s9, [#allocation3]  }
 0x31e   :  { %533 = dma.done.wait [#allocation3], 128  }
 0x31f   :  { %534 = vsyncadd [#allocation3], 4294967168 }
 0x320   :  { %410 = vsyncpa [#allocation3], 1 }

</bundles_post_ra>
